<compile_context>
chip_gen: v7x
topology: tpu7x:2x2x1
jax: 0.10.0
libtpu: 0.0.40
codegen_flags: <defaults>
</compile_context>

<pallas_src>
import numpy as np
import jax
import jax.numpy as jnp
from jax.experimental import pallas as pl
from jax.experimental.pallas import tpu as pltpu

C_IN, C_OUT, K, STRIDE, PAD = 1, 3, 1, 2, 21
NEG_SLOPE = -0.752


def _convt_act_kernel(vals_ref, scat_ref, w_ref, b_ref, o_ref):
    """Fused 1x1 transposed-conv scatter + bias + leaky where-activation.

    vals_ref : (N, nh*nw)      contributing input pixels, flattened
    scat_ref : (nh*nw, P)      one-hot scatter matrix, P = H_out * W_out
    w_ref    : (1, C_OUT, 1)   per-channel weight
    b_ref    : (1, C_OUT, 1)   per-channel bias
    o_ref    : (N, C_OUT, P)   lane-dense flattened output
    """
    # Scatter contributing pixels onto the flattened output plane with one
    # small matmul (MXU); non-contributing positions come out as 0.
    scat = jnp.dot(vals_ref[...], scat_ref[...],
                   preferred_element_type=jnp.float32)           # (N, P)
    # Broadcast over the 3 output channels in a single pass.
    z1 = scat[:, None, :] * w_ref[...] + b_ref[...]              # (N, C, P)
    o_ref[...] = jnp.where(z1 > 0, z1, z1 * NEG_SLOPE)


def model_forward(x, weight, bias):
    """x: (N, 1, H, W) f32; weight: (1, 3, 1, 1) f32; bias: (3,) f32."""
    N, _, H, W = x.shape
    H_out = (H - 1) * STRIDE - 2 * PAD + K
    W_out = (W - 1) * STRIDE - 2 * PAD + K
    assert H_out > 0 and W_out > 0, "input too small for this ConvTranspose2d"

    # Contributing input pixels: oh = ih*STRIDE - PAD must land in [0, H_out).
    ih_lo = -(-PAD // STRIDE)
    ih_hi = min(H - 1, (H_out - 1 + PAD) // STRIDE)
    iw_lo = -(-PAD // STRIDE)
    iw_hi = min(W - 1, (W_out - 1 + PAD) // STRIDE)
    nh, nw = ih_hi - ih_lo + 1, iw_hi - iw_lo + 1
    assert nh > 0 and nw > 0
    oh_lo = ih_lo * STRIDE - PAD
    ow_lo = iw_lo * STRIDE - PAD
    P = H_out * W_out

    # Constant one-hot scatter matrix: slab pixel (k, j) -> output pixel
    # (oh_lo + 2k, ow_lo + 2j), flattened on both sides.  Built with numpy at
    # trace time, so under jit it is a baked-in constant.
    s_np = np.zeros((nh * nw, P), np.float32)
    r = np.arange(nh * nw)
    oh = oh_lo + STRIDE * (r // nw)
    ow = ow_lo + STRIDE * (r % nw)
    s_np[r, oh * W_out + ow] = 1.0
    scat_mat = jnp.asarray(s_np)

    # Contiguous contributing slab, flattened (single tiny slice, no scatter).
    vals = x[:, 0, ih_lo:ih_hi + 1, iw_lo:iw_hi + 1].reshape(N, nh * nw)
    w3 = weight.reshape(1, C_OUT, 1).astype(x.dtype)
    b3 = bias.reshape(1, C_OUT, 1).astype(x.dtype)

    out_flat = pl.pallas_call(
        _convt_act_kernel,
        out_shape=jax.ShapeDtypeStruct((N, C_OUT, P), x.dtype),
        in_specs=[pl.BlockSpec(memory_space=pltpu.MemorySpace.VMEM)] * 4,
        out_specs=pl.BlockSpec(memory_space=pltpu.MemorySpace.VMEM),
    )(vals, scat_mat, w3, b3)

    # F.interpolate(scale_factor=[1.0, 1.0], mode='nearest') is the identity.
    # The reshape below is a free (bitcast) row-major reshape.
    return out_flat.reshape(N, C_OUT, H_out, W_out)


if __name__ == "__main__":
    key = jax.random.PRNGKey(0)
    k1, k2, k3 = jax.random.split(key, 3)

    N, H, W = 2, 32, 32
    x = jax.random.normal(k1, (N, C_IN, H, W), jnp.float32)
    # Deterministic parameter init (shapes match nn.ConvTranspose2d(1, 3, 1)).
    weight = jax.random.normal(k2, (C_IN, C_OUT, K, K), jnp.float32) * 0.5
    bias = jax.random.normal(k3, (C_OUT,), jnp.float32) * 0.1

    fwd = jax.jit(model_forward)
    out = jax.block_until_ready(fwd(x, weight, bias))

    # Independent numpy reference (direct transposed-conv scatter definition).
    xn = np.asarray(x)
    wn = np.asarray(weight).reshape(C_OUT)
    bn = np.asarray(bias)
    H_out = (H - 1) * STRIDE - 2 * PAD + K
    W_out = (W - 1) * STRIDE - 2 * PAD + K
    ref = np.zeros((N, C_OUT, H_out, W_out), np.float32) + bn[None, :, None, None]
    for ih in range(H):
        oh = ih * STRIDE - PAD
        if not (0 <= oh < H_out):
            continue
        for iw in range(W):
            ow = iw * STRIDE - PAD
            if not (0 <= ow < W_out):
                continue
            ref[:, :, oh, ow] += xn[:, 0, ih, iw][:, None] * wn[None, :]
    ref = np.where(ref > 0, ref, ref * NEG_SLOPE)

    np.testing.assert_allclose(np.asarray(out), ref, rtol=1e-5, atol=1e-5)
    assert out.shape == (N, C_OUT, H_out, W_out)
    print("KERNEL_OK")
</pallas_src>

<mosaic_0001>
module attributes {stable_mosaic.version = 11 : i64} {
  func.func @_convt_act_kernel(%arg0: memref<2x100xf32, #tpu.memory_space<vmem>>, %arg1: memref<100x441xf32, #tpu.memory_space<vmem>>, %arg2: memref<1x3x1xf32, #tpu.memory_space<vmem>>, %arg3: memref<1x3x1xf32, #tpu.memory_space<vmem>>, %arg4: memref<2x3x441xf32, #tpu.memory_space<vmem>>) attributes {dimension_semantics = [], scalar_prefetch = 0 : i64, scratch_operands = 0 : i64, tpu.core_type = #tpu.core_type<tc>} {
    %c0 = arith.constant 0 : index
    %c0_0 = arith.constant 0 : index
    %0 = vector.load %arg0[%c0, %c0_0] : memref<2x100xf32, #tpu.memory_space<vmem>>, vector<2x100xf32>
    %c0_1 = arith.constant 0 : index
    %c0_2 = arith.constant 0 : index
    %1 = vector.load %arg1[%c0_1, %c0_2] : memref<100x441xf32, #tpu.memory_space<vmem>>, vector<100x441xf32>
    %cst = arith.constant dense<0.000000e+00> : vector<2x441xf32>
    %2 = tpu.matmul %0, %1, %cst {dimension_numbers = #tpu.dot_dimension_numbers<[1], [0], [0], [1], [0, 0, 1, 1], [], []>} : vector<2x100xf32>, vector<100x441xf32>, vector<2x441xf32> -> vector<2x441xf32>
    %3 = vector.shape_cast %2 : vector<2x441xf32> to vector<2x1x441xf32>
    %c0_3 = arith.constant 0 : index
    %c0_4 = arith.constant 0 : index
    %c0_5 = arith.constant 0 : index
    %4 = vector.load %arg2[%c0_3, %c0_4, %c0_5] : memref<1x3x1xf32, #tpu.memory_space<vmem>>, vector<1x3x1xf32>
    %5 = vector.broadcast %3 : vector<2x1x441xf32> to vector<2x3x441xf32>
    %6 = vector.broadcast %4 : vector<1x3x1xf32> to vector<2x3x441xf32>
    %7 = arith.mulf %5, %6 : vector<2x3x441xf32>
    %c0_6 = arith.constant 0 : index
    %c0_7 = arith.constant 0 : index
    %c0_8 = arith.constant 0 : index
    %8 = vector.load %arg3[%c0_6, %c0_7, %c0_8] : memref<1x3x1xf32, #tpu.memory_space<vmem>>, vector<1x3x1xf32>
    %9 = vector.broadcast %8 : vector<1x3x1xf32> to vector<2x3x441xf32>
    %10 = arith.addf %7, %9 : vector<2x3x441xf32>
    %cst_9 = arith.constant 0.000000e+00 : f32
    %11 = vector.broadcast %cst_9 : f32 to vector<2x3x441xf32>
    %12 = arith.cmpf ogt, %10, %11 : vector<2x3x441xf32>
    %cst_10 = arith.constant -7.520000e-01 : f32
    %13 = vector.broadcast %cst_10 : f32 to vector<2x3x441xf32>
    %14 = arith.mulf %10, %13 : vector<2x3x441xf32>
    %15 = arith.select %12, %10, %14 : vector<2x3x441xi1>, vector<2x3x441xf32>
    %c0_11 = arith.constant 0 : index
    %c0_12 = arith.constant 0 : index
    %c0_13 = arith.constant 0 : index
    %16 = vector.load %arg4[%c0_11, %c0_12, %c0_13] : memref<2x3x441xf32, #tpu.memory_space<vmem>>, vector<2x3x441xf32>
    tpu.vector_store %arg4[%c0_11, %c0_12, %c0_13], %15 {strides = array<i32>} : memref<2x3x441xf32, #tpu.memory_space<vmem>>, vector<2x3x441xf32>,
    return
  }
}

</mosaic_0001>

<bundles_post_ra>
// kernel: squeeze.1
= control target key start
LH: loop header
LB: loop body
LE: loop exit
PB: predicated region body
PF: predicated region fallthrough
CT: control target
= control target key end

     0   :  { %s7_s6 = smov 3  ;;  %s21_s9 = smov 3  ;;  %vm4_vm0 = vcmask 80896   ;;  %vm11_vm1 = vcmask 818896   ;;  %vm18_vm2 = vcmask 736896   ;;  %vm25_vm3 = vcmask 654896   ;;  %s145_s0 = inlined_call_operand.vmem [shape: f32[2,1,10,10], index: 0, kind: input, shape index: {}]   ;;  %s146_s1 = inlined_call_operand.vmem [shape: f32[2,100], index: 1, kind: output, shape index: {}]  }
   0x1   :  { %v75_v0 = vld [vmem:[%s145_s0 + $0x9] ss:$16 sm:%s7_s6]   ;;  %s93_s10 = smov 90   ;;  %v77_v1 = vld [vmem:[%s145_s0 + $0x7] ss:$16 sm:%s21_s9]   ;;  %s14_s13 = smov 3 }
   0x2   :  { %9 = vrot.lane.b32.xlu0 %v75_v0, %s93_s10  ;;  %s94_s14 = smov 70   ;;  %v76_v2 = vld [vmem:[%s145_s0 + $0x8] ss:$16 sm:%s14_s13]   ;;  %s28_s17 = smov 3  ;;  %vm32_vm4 = vcmask 572896   ;;  %vm39_vm5 = vcmask 490896  }
   0x3   :  { %23 = vrot.lane.b32.xlu1 %v77_v1, %s94_s14  ;;  %v78_v3 = vld [vmem:[%s145_s0 + $0x6] ss:$16 sm:%s28_s17]   ;;  %s35_s20 = smov 3  ;;  %s42_s21 = smov 3  ;;  %vm46_vm6 = vcmask 408896   ;;  %vm53_vm7 = vcmask 326896  }
   0x4   :  { %s95_s22 = smov 80   ;;  %s96_s23 = smov 60   ;;  %v79_v4 = vld [vmem:[%s145_s0 + $0x5] ss:$16 sm:%s35_s20]   ;;  %v80_v5 = vld [vmem:[%s145_s0 + $0x4] ss:$16 sm:%s42_s21]  }
   0x5   :  { %s49_s28 = smov 3  ;;  %s56_s29 = smov 3  ;;  %vm60_vm8 = vcmask 244896   ;;  %vm67_vm9 = vcmask 162896  }
   0x6   :  { %16 = vrot.lane.b32.xlu0 %v76_v2, %s95_s22  ;;  %s2_s30 = smov 3  ;;  %s97_s2 = smov 50   ;;  %v81_v7 = vld [vmem:[%s145_s0 + $0x3] ss:$16 sm:%s49_s28]  }
   0x7   :  { %30 = vrot.lane.b32.xlu1 %v78_v3, %s96_s23  ;;  %v3_v6 = vld [vmem:[%s145_s0] ss:$16 sm:%s2_s30]   ;;  %s98_s5 = smov 40   ;;  %s63_s10 = smov 3 }
   0x8   :  { %5 = vst.msk [vmem:[#allocation0] sm:$0x3] %vm4_vm0, %v3_v6   ;;  %v82_v8 = vld [vmem:[%s145_s0 + $0x2] ss:$16 sm:%s56_s29]   ;;  %s99_s11 = smov 30   ;;  %s100_s12 = smov 20  }
   0x9   :  { %v83_v9 = vld [vmem:[%s145_s0 + $0x1] ss:$16 sm:%s63_s10]   ;;  %s101_s0 = smov 10  }
   0xa   :  { %37 = vrot.lane.b32.xlu0 %v79_v4, %s97_s2 }
   0xb   :  { %44 = vrot.lane.b32.xlu1 %v80_v5, %s98_s5 }
   0xe   :  { %51 = vrot.lane.b32.xlu0 %v81_v7, %s99_s11 }
   0xf   :  { %58 = vrot.lane.b32.xlu1 %v82_v8, %s100_s12 }
  0x12   :  { %65 = vrot.lane.b32.xlu0 %v83_v9, %s101_s0 }
  0x74   :  { %v10_v10 = vpop.permute.xlu0 %9  }
  0x75   :  { %12 = vst.msk [vmem:[#allocation0] sm:$0x3] %vm11_vm1, %v10_v10   ;;  %v24_v11 = vpop.permute.xlu1 %23  }
  0x78   :  { %v17_v12 = vpop.permute.xlu0 %16  }
  0x79   :  { %19 = vst.msk [vmem:[#allocation0] sm:$0x3] %vm18_vm2, %v17_v12   ;;  %v31_v13 = vpop.permute.xlu1 %30  }
  0x7a   :  { %26 = vst.msk [vmem:[#allocation0] sm:$0x3] %vm25_vm3, %v24_v11  }
  0x7b   :  { %33 = vst.msk [vmem:[#allocation0] sm:$0x3] %vm32_vm4, %v31_v13  }
  0x7c   :  { %v38_v14 = vpop.permute.xlu0 %37  }
  0x7d   :  { %40 = vst.msk [vmem:[#allocation0] sm:$0x3] %vm39_vm5, %v38_v14   ;;  %v45_v15 = vpop.permute.xlu1 %44  }
  0x7e   :  { %47 = vst.msk [vmem:[#allocation0] sm:$0x3] %vm46_vm6, %v45_v15  }
  0x80   :  { %v52_v16 = vpop.permute.xlu0 %51  }
  0x81   :  { %54 = vst.msk [vmem:[#allocation0] sm:$0x3] %vm53_vm7, %v52_v16   ;;  %v59_v17 = vpop.permute.xlu1 %58  }
  0x82   :  { %61 = vst.msk [vmem:[#allocation0] sm:$0x3] %vm60_vm8, %v59_v17  }
  0x84   :  { %v66_v18 = vpop.permute.xlu0 %65  }
  0x85   :  { %68 = vst.msk [vmem:[#allocation0] sm:$0x3] %vm67_vm9, %v66_v18  }
  0x8c   :  { %v72_v19 = vld [vmem:[#allocation0] sm:$0x3] }
  0x8d   :  { %74 = vst [vmem:[%s146_s1] sm:$0x3] %v72_v19 }

// kernel: model_forward.1
= control target key start
LH: loop header
LB: loop body
LE: loop exit
PB: predicated region body
PF: predicated region fallthrough
CT: control target
= control target key end

     0   :  { %9 = vsyncpa [#allocation3], 0  ;;  %s484_s15 = smov [#allocation2]   ;;  %s558_s0 = inlined_call_operand.vmem [shape: f32[2,100], index: 0, kind: input, shape index: {}]   ;;  %s559_s1 = inlined_call_operand.hbm [shape: f32[100,441], index: 1, kind: input, shape index: {}]   ;;  %s560_s2 = inlined_call_operand.vmem [shape: f32[1,3,1], index: 2, kind: input, shape index: {}]   ;;  %s561_s3 = inlined_call_operand.vmem [shape: f32[1,3,1], index: 3, kind: input, shape index: {}]   ;;  %s562_s4 = inlined_call_operand.vmem [shape: f32[2,3,441], index: 4, kind: output, shape index: {}]  }
   0x1   :  { %s17_s16 = sshll.u32 %s484_s15, 4  ;;  %s460_s19 = scalar_lea.hbm %s559_s1, 6656  ;;  %s18_s16 = int_to_ptr.vmem [resolvable:$true] %s17_s16 }
   0x2   :  { %p461_p0 = scmp.ne.s32.totalorder %s559_s1, %s460_s19  ;;  %p464_p1 = scmp.lt.u32.totalorder %s460_s19, %s559_s1 }
   0x4   :  { %p466_p2 = pnand %p464_p1, %p461_p0 }
   0x6   :  { %469 = shalt.err (!%p466_p2)
}
   0x7   :  { %s470_s24 = scalar_lea.vmem %s18_s16, 6656  ;;  %p475_p4 = scmp.lt.s32.totalorder %s18_s16, %s18_s16 }
   0x8   :  { %p471_p3 = scmp.ne.s32.totalorder %s18_s16, %s470_s24  ;;  %p476_p5 = scmp.lt.s32.totalorder %s470_s24, %s470_s24 }
   0xa   :  { %p477_p6 = por %p476_p5, %p475_p4 }
   0xc   :  { %p478_p7 = pnand %p477_p6, %p471_p3 }
   0xe   :  { %481 = shalt.err (!%p478_p7)
}
   0xf   :  { %s485_s25 = smov 512   ;;  %s486_s26 = smov 32  }
  0x10   :  { %23 = dma.hbm_to_vmem [thread:$0]  %s559_s1, 6656, %s18_s16, [#allocation3], %s485_s25, %s485_s25, %s486_s26  }
  0x11   :  { %482 = dma.done.wait [#allocation3], 6656  }
  0x12   :  { %483 = vsyncadd [#allocation3], 4294960640  ;;  %v487_v0 = vmov 0.0   ;;  %v488_v1 = vmov 0   ;;  %v33_v2 = vld [vmem:[#allocation2 + $0x8] sm:$0xff]  ;;  %v35_v4 = vld [vmem:[#allocation2 + $0x18] sm:$0xff] }
  0x13   :  { %165 = vmatprep.mubr.f32.mxu0 %v487_v0  ;;  %236 = vmatprep.mubr.f32.mxu1 %v487_v0  ;;  %v37_v3 = vld [vmem:[#allocation2 + $0x28] sm:$0xff]  ;;  %v39_v6 = vld [vmem:[#allocation2 + $0x38] sm:$0xff]  ;;  %v32_v7 = vld [vmem:[#allocation2] sm:$0xff]  ;;  %vm88_vm0 = vcmask 1043456   ;;  %vm84_vm1 = vcmask 818176   ;;  %vm388_vm2 = vcmask 1042432  }
  0x14   :  { %459 = vset.pattern.permute.xlu0 %v488_v1  ;;  %v405_v5 = vpack.c.bf16 %v37_v3, %v33_v2  ;;  %v36_v8 = vld [vmem:[#allocation2 + $0x20] sm:$0xff]  ;;  %v429_v9 = vpack.c.bf16 %v39_v6, %v35_v4  ;;  %v34_v11 = vld [vmem:[#allocation2 + $0x10] sm:$0xff]  ;;  %v41_v13 = vld [vmem:[#allocation2 + $0x48] sm:$0xff]  ;;  %vm389_vm3 = vcmask 464900  }
  0x15   :  { %v407_v10 = vpack.c.bf16 %v36_v8, %v32_v7  ;;  %v38_v12 = vld [vmem:[#allocation2 + $0x30] sm:$0xff]  ;;  %v45_v15 = vld [vmem:[#allocation2 + $0x68] sm:$0xff]  ;;  %v43_v16 = vld [vmem:[#allocation2 + $0x58] sm:$0xff] }
  0x16   :  { %406 = vmatprep.subr.bf16.mxu0 %v405_v5  ;;  %v431_v14 = vpack.c.bf16 %v38_v12, %v34_v11  ;;  %v47_v17 = vld [vmem:[#allocation2 + $0x78] sm:$0xff]  ;;  %430 = vmatprep.subr.bf16.mxu1 %v429_v9  ;;  %v409_v18 = vpack.c.bf16 %v45_v15, %v41_v13  ;;  %v40_v20 = vld [vmem:[#allocation2 + $0x40] sm:$0xff]  ;;  %v42_v22 = vld [vmem:[#allocation2 + $0x50] sm:$0xff] }
  0x17   :  { %408 = vmatpush1.bf16.msra.mxu0 %v407_v10  ;;  %v433_v19 = vpack.c.bf16 %v47_v17, %v43_v16  ;;  %v44_v21 = vld [vmem:[#allocation2 + $0x60] sm:$0xff]  ;;  %v46_v24 = vld [vmem:[#allocation2 + $0x70] sm:$0xff]  ;;  %v49_v25 = vld [vmem:[#allocation2 + $0x88] sm:$0xff]  ;;  %v489_v17 = vmov 1966171168  }
  0x18   :  { %432 = vmatpush1.bf16.msra.mxu1 %v431_v14  ;;  %v411_v23 = vpack.c.bf16 %v44_v21, %v40_v20  ;;  %v53_v26 = vld [vmem:[#allocation2 + $0xa8] sm:$0xff]  ;;  %410 = vmatprep.subr.bf16.mxu0 %v409_v18  ;;  %v435_v27 = vpack.c.bf16 %v46_v24, %v42_v22  ;;  %v51_v29 = vld [vmem:[#allocation2 + $0x98] sm:$0xff]  ;;  %v48_v31 = vld [vmem:[#allocation2 + $0x80] sm:$0xff]  ;;  %v250_v18 = vunpack.c.l.s4 %v489_v17 }
  0x19   :  { %434 = vmatprep.subr.bf16.mxu1 %v433_v19  ;;  %v413_v28 = vpack.c.bf16 %v53_v26, %v49_v25  ;;  %v55_v30 = vld [vmem:[#allocation2 + $0xb8] sm:$0xff]  ;;  %v52_v33 = vld [vmem:[#allocation2 + $0xa0] sm:$0xff]  ;;  %v50_v34 = vld [vmem:[#allocation2 + $0x90] sm:$0xff]  ;;  %v252_v19 = vlaneseq }
  0x1a   :  { %v437_v32 = vpack.c.bf16 %v55_v30, %v51_v29  ;;  %v54_v35 = vld [vmem:[#allocation2 + $0xb0] sm:$0xff]  ;;  %v415_v36 = vpack.c.bf16 %v52_v33, %v48_v31  ;;  %v57_v37 = vld [vmem:[#allocation2 + $0xc8] sm:$0xff]  ;;  %v59_v39 = vld [vmem:[#allocation2 + $0xd8] sm:$0xff]  ;;  %v251_v20 = vunpack.c.0.s8 %v250_v18 }
  0x1b   :  { %412 = vmatpush1.bf16.msra.mxu0 %v411_v23  ;;  %v61_v38 = vld [vmem:[#allocation2 + $0xe8] sm:$0xff]  ;;  %v439_v40 = vpack.c.bf16 %v54_v35, %v50_v34  ;;  %v63_v42 = vld [vmem:[#allocation2 + $0xf8] sm:$0xff]  ;;  %v56_v43 = vld [vmem:[#allocation2 + $0xc0] sm:$0xff]  ;;  %v253_v21 = vshrl.u32 %v252_v19, 7 }
  0x1c   :  { %436 = vmatpush1.bf16.msra.mxu1 %v435_v27  ;;  %414 = vmatprep.subr.bf16.mxu0 %v413_v28  ;;  %v417_v41 = vpack.c.bf16 %v61_v38, %v57_v37  ;;  %v60_v44 = vld [vmem:[#allocation2 + $0xe0] sm:$0xff]  ;;  %v441_v45 = vpack.c.bf16 %v63_v42, %v59_v39  ;;  %v58_v46 = vld [vmem:[#allocation2 + $0xd0] sm:$0xff]  ;;  %v65_v48 = vld [vmem:[#allocation2 + $0x108] sm:$0xff] }
  0x1d   :  { %438 = vmatprep.subr.bf16.mxu1 %v437_v32  ;;  %v62_v47 = vld [vmem:[#allocation2 + $0xf0] sm:$0xff]  ;;  %v69_v49 = vld [vmem:[#allocation2 + $0x128] sm:$0xff]  ;;  %v67_v50 = vld [vmem:[#allocation2 + $0x118] sm:$0xff]  ;;  %v419_v52 = vpack.c.bf16 %v60_v44, %v56_v43  ;;  %v254_v23 = vsub.s32 %v251_v20, %v253_v21  ;;  %v282_v31 = vsub.s32 0, %v253_v21  ;;  %v286_v32 = vsub.s32 1, %v253_v21 }
  0x1e   :  { %v71_v51 = vld [vmem:[#allocation2 + $0x138] sm:$0xff]  ;;  %v443_v53 = vpack.c.bf16 %v62_v47, %v58_v46  ;;  %v421_v54 = vpack.c.bf16 %v69_v49, %v65_v48  ;;  %v64_v55 = vld [vmem:[#allocation2 + $0x100] sm:$0xff]  ;;  %v66_v57 = vld [vmem:[#allocation2 + $0x110] sm:$0xff]  ;;  %v290_v35 = vsub.s32 2, %v253_v21 }
  0x1f   :  { %416 = vmatpush1.bf16.msra.mxu0 %v415_v36  ;;  %v68_v56 = vld [vmem:[#allocation2 + $0x120] sm:$0xff]  ;;  %v445_v58 = vpack.c.bf16 %v71_v51, %v67_v50  ;;  %v70_v59 = vld [vmem:[#allocation2 + $0x130] sm:$0xff]  ;;  %v73_v60 = vld [vmem:[#allocation2 + $0x148] sm:$0xff]  ;;  %v294_v36 = vsub.s32 3, %v253_v21 }
  0x20   :  { %440 = vmatpush1.bf16.msra.mxu1 %v439_v40  ;;  %418 = vmatprep.subr.bf16.mxu0 %v417_v41  ;;  %v77_v61 = vld [vmem:[#allocation2 + $0x168] sm:$0xff]  ;;  %v75_v62 = vld [vmem:[#allocation2 + $0x158] sm:$0xff]  ;;  %v423_v0 = vpack.c.bf16 %v68_v56, %v64_v55  ;;  %v447_v1 = vpack.c.bf16 %v70_v59, %v66_v57  ;;  %v72_v3 = vld [vmem:[#allocation2 + $0x140] sm:$0xff] }
  0x21   :  { %442 = vmatprep.subr.bf16.mxu1 %v441_v45  ;;  %v79_v63 = vld [vmem:[#allocation2 + $0x178] sm:$0xff]  ;;  %v425_v2 = vpack.c.bf16 %v77_v61, %v73_v60  ;;  %v76_v4 = vld [vmem:[#allocation2 + $0x160] sm:$0xff]  ;;  %v74_v7 = vld [vmem:[#allocation2 + $0x150] sm:$0xff] }
  0x22   :  { %v279_v5 = vld [vmem:[%s560_s2] sm:$0x7]  ;;  %v449_v6 = vpack.c.bf16 %v79_v63, %v75_v62  ;;  %v78_v8 = vld [vmem:[#allocation2 + $0x170] sm:$0xff]  ;;  %v427_v10 = vpack.c.bf16 %v76_v4, %v72_v3  ;;  %v81_v12 = vld [vmem:[#allocation2 + $0x188] sm:$0xf] }
  0x23   :  { %420 = vmatpush1.bf16.msra.mxu0 %v419_v52  ;;  %322 = vperm.xlu0 %459, %v279_v5   ;;  %v333_v9 = vld [vmem:[%s561_s3] sm:$0x7]  ;;  %v451_v11 = vpack.c.bf16 %v78_v8, %v74_v7  ;;  %v83_v13 = vld [vmem:[#allocation2 + $0x198] sm:$0xf]  ;;  %v82_v15 = vld [vmem:[#allocation2 + $0x190] sm:$0xf] }
  0x24   :  { %444 = vmatpush1.bf16.msra.mxu1 %v443_v53  ;;  %422 = vmatprep.subr.bf16.mxu0 %v421_v54  ;;  %v80_v14 = vld [vmem:[#allocation2 + $0x180] sm:$0xf]  ;;  %vm390_vm12 = vmor %vm389_vm3, %vm388_vm2 }
  0x25   :  { %446 = vmatprep.subr.bf16.mxu1 %v445_v58  ;;  %v31_v16 = vld [vmem:[%s558_s0] sm:$0x3] }
  0x27   :  { %424 = vmatpush1.bf16.msra.mxu0 %v423_v0  ;;  %336 = vperm.xlu0 %459, %v333_v9  }
  0x28   :  { %448 = vmatpush1.bf16.msra.mxu1 %v447_v1  ;;  %426 = vmatprep.subr.bf16.mxu0 %v425_v2 }
  0x29   :  { %450 = vmatprep.subr.bf16.mxu1 %v449_v6 }
  0x2b   :  { %428 = vmatpush1.bf16.msra.mxu0 %v427_v10 }
  0x2c   :  { %452 = vmatpush1.bf16.msra.mxu1 %v451_v11  ;;  %399 = vmatprep.subr.msk.mxu0 %vm88_vm0, %v81_v12 }
  0x2d   :  { %402 = vmatprep.subr.msk.mxu1 %vm88_vm0, %v83_v13 }
  0x2f   :  { %400 = vmatpush1.msk.msra.mxu0 %vm88_vm0, %v80_v14 }
  0x30   :  { %403 = vmatpush1.msk.msra.mxu1 %vm88_vm0, %v82_v15  ;;  %401 = vmatmul.mubr.msk.f32.vlgmr.msra.gmra.mrb[0].mxu0 %vm84_vm1, %v31_v16 }
  0x31   :  { %404 = vmatmul.mubr.msk.f32.vlgmr.msra.gmra.mrb[0].mxu1 %vm84_vm1, %v31_v16 }
  0xa2   :  { %v323_v37 = vpop.permute.xlu0 %322 }
  0xa6   :  { %v337_v52 = vpop.permute.xlu0 %336 }
 0x103   :  { %v167_v22 = vpop.f32.mrb[0].mxu0 }
 0x104   :  { %v238_v24 = vpop.f32.mrb[0].mxu1  ;;  %v169_v25 = vpop.f32.mrb[1].mxu0 }
 0x105   :  { %v247_v26 = vcombine.low %v167_v22, %v169_v25  ;;  %v240_v27 = vpop.f32.mrb[1].mxu1 }
 0x106   :  { %v248_v28 = vcombine.low %v238_v24, %v240_v27 }
 0x107   :  { %v255_v29 = vrot.slane %v247_v26, %v254_v23 }
 0x108   :  { %v262_v30 = vrot.slane %v248_v28, %v254_v23 }
 0x10a   :  { %v263_v33 = vcombine.low %v255_v29, %v262_v30  ;;  %v264_v34 = vcombine.high %v255_v29, %v262_v30 }
 0x10c   :  { %v271_v38 = vrot.slane %v263_v33, %v254_v23  ;;  %v278_v39 = vrot.slane %v264_v34, %v254_v23 }
 0x10e   :  { %v283_v40 = vrot.slane %v271_v38, %v282_v31  ;;  %v287_v41 = vrot.slane %v271_v38, %v286_v32  ;;  %v291_v42 = vrot.slane %v271_v38, %v290_v35  ;;  %v295_v43 = vrot.slane %v271_v38, %v294_v36 }
 0x10f   :  { %v299_v44 = vrot.slane %v278_v39, %v282_v31  ;;  %v303_v45 = vrot.slane %v278_v39, %v286_v32  ;;  %v307_v46 = vrot.slane %v278_v39, %v290_v35  ;;  %v311_v47 = vrot.slane %v278_v39, %v294_v36 }
 0x110   :  { %v325_v48 = vmul.f32 %v323_v37, %v283_v40  ;;  %v326_v49 = vmul.f32 %v323_v37, %v287_v41  ;;  %v327_v50 = vmul.f32 %v323_v37, %v291_v42  ;;  %v328_v51 = vmul.f32 %v323_v37, %v295_v43 }
 0x111   :  { %v329_v53 = vmul.f32 %v323_v37, %v299_v44  ;;  %v330_v54 = vmul.f32 %v323_v37, %v303_v45  ;;  %v331_v55 = vmul.f32 %v323_v37, %v307_v46  ;;  %v332_v56 = vmul.f32 %v323_v37, %v311_v47 }
 0x112   :  { %v339_v57 = vadd.f32 %v337_v52, %v325_v48  ;;  %v340_v58 = vadd.f32 %v337_v52, %v326_v49  ;;  %v341_v59 = vadd.f32 %v337_v52, %v327_v50  ;;  %v342_v60 = vadd.f32 %v337_v52, %v328_v51 }
 0x113   :  { %v343_v61 = vadd.f32 %v337_v52, %v329_v53  ;;  %v344_v62 = vadd.f32 %v337_v52, %v330_v54  ;;  %v345_v63 = vadd.f32 %v337_v52, %v331_v55  ;;  %v346_v0 = vadd.f32 %v337_v52, %v332_v56 }
 0x114   :  { %vm347_vm4 = vcmp.gt.f32.partialorder %v339_v57, 0.0  ;;  %vm348_vm5 = vcmp.gt.f32.partialorder %v340_v58, 0.0  ;;  %vm349_vm6 = vcmp.gt.f32.partialorder %v341_v59, 0.0  ;;  %vm350_vm7 = vcmp.gt.f32.partialorder %v342_v60, 0.0 }
 0x115   :  { %vm351_vm8 = vcmp.gt.f32.partialorder %v343_v61, 0.0  ;;  %vm352_vm9 = vcmp.gt.f32.partialorder %v344_v62, 0.0  ;;  %vm353_vm10 = vcmp.gt.f32.partialorder %v345_v63, 0.0  ;;  %vm354_vm11 = vcmp.gt.f32.partialorder %v346_v0, 0.0 }
 0x116   :  { %v355_v1 = vmul.f32 -0.752, %v339_v57  ;;  %v356_v2 = vmul.f32 -0.752, %v340_v58  ;;  %v357_v3 = vmul.f32 -0.752, %v341_v59 }
 0x117   :  { %v358_v4 = vmul.f32 -0.752, %v342_v60  ;;  %v359_v5 = vmul.f32 -0.752, %v343_v61  ;;  %v360_v6 = vmul.f32 -0.752, %v344_v62 }
 0x118   :  { %v361_v7 = vmul.f32 -0.752, %v345_v63  ;;  %v362_v8 = vmul.f32 -0.752, %v346_v0  ;;  %v363_v9 = vsel %vm347_vm4, %v339_v57, %v355_v1  ;;  %v364_v10 = vsel %vm348_vm5, %v340_v58, %v356_v2 }
 0x119   :  { %v365_v11 = vsel %vm349_vm6, %v341_v59, %v357_v3  ;;  %v366_v12 = vsel %vm350_vm7, %v342_v60, %v358_v4  ;;  %v367_v13 = vsel %vm351_vm8, %v343_v61, %v359_v5  ;;  %v368_v14 = vsel %vm352_vm9, %v344_v62, %v360_v6 }
 0x11a   :  { %v369_v15 = vsel %vm353_vm10, %v345_v63, %v361_v7  ;;  %v370_v16 = vsel %vm354_vm11, %v346_v0, %v362_v8  ;;  %v379_v17 = vcombine.low %v363_v9, %v364_v10  ;;  %v380_v18 = vcombine.low %v365_v11, %v366_v12 }
 0x11b   :  { %v381_v19 = vcombine.low %v367_v13, %v368_v14  ;;  %v382_v20 = vcombine.low %v369_v15, %v370_v16 }
 0x11c   :  { %387 = vst [vmem:[%s562_s4] sm:$0x77] %v379_v17  ;;  %391 = vst.msk [vmem:[%s562_s4 + $0x8] sm:$0x77] %vm390_vm12, %v380_v18 }
 0x11d   :  { %392 = vst [vmem:[%s562_s4 + $0x10] sm:$0x77] %v381_v19  ;;  %393 = vst.msk [vmem:[%s562_s4 + $0x18] sm:$0x77] %vm390_vm12, %v382_v20 }
 0x11e   :  { %398 = vsyncpa [#allocation3], 1 }

</bundles_post_ra>
